<compile_context>
chip_gen: v6e
topology: v6e:2x2x1
jax: 0.10.0
libtpu: 0.0.40
codegen_flags: <defaults>
</compile_context>

<pallas_src>
import math
from functools import partial

import jax
import jax.numpy as jnp
from jax import lax
from jax.experimental import pallas as pl
from jax.experimental.pallas import tpu as pltpu


def _layernorm(x, g, b, eps=1e-5):
    mean = jnp.mean(x, axis=-1, keepdims=True)
    var = jnp.mean((x - mean) ** 2, axis=-1, keepdims=True)
    return (x - mean) * lax.rsqrt(var + eps) * g + b


def _causal_mask(seq):
    row = lax.broadcasted_iota(jnp.int32, (seq, seq), 0)
    col = lax.broadcasted_iota(jnp.int32, (seq, seq), 1)
    return col <= row                                   # (N, N) bool, built once per kernel


def _layer_step(h, wqkv, w1, w2, vec, causal, bt, seq, n_embd, scale):
    """One transformer layer on the flattened (M = Bt*N, E) hidden state.

    h is f32; weights are bf16; LayerNorm / softmax stay in f32; matmuls run in bf16 with
    f32 accumulation on the MXU.
    """
    E = n_embd
    M = bt * seq
    hb = h.astype(jnp.bfloat16)

    ln1_g, ln1_b = vec[0:1], vec[1:2]
    b1, b2 = vec[2:3], vec[3:4]
    ln2_g, ln2_b = vec[4:5], vec[5:6]

    # Fused QKV: one (M, E) @ (E, 3E) MXU pass instead of three under-filled dots.
    qkv = jnp.dot(hb, wqkv, preferred_element_type=jnp.float32)            # (M, 3E) f32
    # TODO(synk): these static slices are lane-tile-aligned only when E % 128 == 0; for
    # non-toy configs pad E to a multiple of 128 at pack time.
    q = qkv[:, :E] * scale                               # 1/sqrt(E) folded into q
    k = qkv[:, E:2 * E]
    v = qkv[:, 2 * E:]

    qb = q.reshape(bt, seq, E).astype(jnp.bfloat16)
    kb = k.reshape(bt, seq, E).astype(jnp.bfloat16)
    vb = v.reshape(bt, seq, E).astype(jnp.bfloat16)

    # Causal attention (single head over the full E dim, exactly like the PyTorch backbone:
    # its +1.0 bias on allowed positions cancels under softmax, so a select mask is identical).
    # TODO(synk): for long sequences, tile q/kv blocks with an online softmax (flash style)
    # instead of materializing the (Bt, N, N) score matrix (matters first on v7x's 64 MiB VMEM).
    scores = jnp.einsum('bqd,bkd->bqk', qb, kb,
                        preferred_element_type=jnp.float32)                # (Bt, N, N) f32
    scores = jnp.where(causal[None, :, :], scores, -jnp.inf)
    m = jnp.max(scores, axis=-1, keepdims=True)
    p = jnp.exp(scores - m)
    attn = p * pl.reciprocal(jnp.sum(p, axis=-1, keepdims=True), approx=True)
    ctx = jnp.einsum('bqk,bkd->bqd', attn.astype(jnp.bfloat16), vb,
                     preferred_element_type=jnp.float32)                   # (Bt, N, E) f32

    # Residual + LN + MLP + residual + LN (batch folded into M).
    h = _layernorm(h + ctx.reshape(M, E), ln1_g, ln1_b)
    hid = jnp.maximum(
        jnp.dot(h.astype(jnp.bfloat16), w1, preferred_element_type=jnp.float32) + b1, 0.0)
    h = h + jnp.dot(hid.astype(jnp.bfloat16), w2, preferred_element_type=jnp.float32) + b2
    return _layernorm(h, ln2_g, ln2_b)


def resident_kernel(n_layer, n_embd, bt, seq,
                    h0_ref, wqkv_ref, w12_ref, vec_ref, wout_ref, bout_ref, out_ref):
    """grid = (nb,). All layer weights resident in VMEM; layers iterated in-kernel."""
    scale = 1.0 / math.sqrt(n_embd)
    causal = _causal_mask(seq)

    def body(l, h):
        w12 = w12_ref[l]                                 # (2, E, E) bf16
        return _layer_step(h, wqkv_ref[l], w12[0], w12[1], vec_ref[l],
                           causal, bt, seq, n_embd, scale)

    h = lax.fori_loop(0, n_layer, body, h0_ref[...], unroll=True)
    # TODO(synk): for vocab-scale state_size, tile the output projection over S_pad and
    # consider bf16 logits to halve the HBM writeback.
    out_ref[...] = (jnp.dot(h.astype(jnp.bfloat16), wout_ref[...],
                            preferred_element_type=jnp.float32) + bout_ref[...])


def streamed_kernel(n_layer, n_embd, bt, seq,
                    h0_ref, wqkv_ref, w12_ref, vec_ref, wout_ref, bout_ref, out_ref, h_ref):
    """grid = (nb [parallel], L [arbitrary]). One layer's weights streamed per grid step.

    h_ref (VMEM scratch, (Bt*N, E) f32) carries the hidden state across the layer axis; it
    is re-initialized at l == 0 for every batch block. The output projection only runs at
    the last layer and writes a lane-dense (Bt*N, S_pad) block.
    """
    l = pl.program_id(1)
    scale = 1.0 / math.sqrt(n_embd)
    causal = _causal_mask(seq)

    @pl.when(l == 0)
    def _():
        h_ref[...] = h0_ref[...]

    w12 = w12_ref[...]                                   # (2, E, E) bf16
    h = _layer_step(h_ref[...], wqkv_ref[...], w12[0], w12[1], vec_ref[...],
                    causal, bt, seq, n_embd, scale)
    h_ref[...] = h

    @pl.when(l == n_layer - 1)
    def _():
        # TODO(synk): for vocab-scale state_size, tile the output projection over S_pad
        # (own grid axis or separate pallas_call) and consider bf16 logits.
        out_ref[...] = (jnp.dot(h.astype(jnp.bfloat16), wout_ref[...],
                                preferred_element_type=jnp.float32) + bout_ref[...])


def pack_params(params, *, n_embd, state_size):
    """One-time parameter packing (hoisted out of the forward; cache and reuse)."""
    E, S = n_embd, state_size
    S_pad = ((S + 127) // 128) * 128                     # lane-dense output last dim
    wqkv = jnp.concatenate([params["wq"], params["wk"], params["wv"]],
                           axis=-1).astype(jnp.bfloat16)                       # (L, E, 3E)
    w12 = jnp.stack([params["w1"], params["w2"]], axis=1).astype(jnp.bfloat16)  # (L, 2, E, E)
    vec = jnp.stack([params["ln1_g"], params["ln1_b"],
                     params["b1"], params["b2"],
                     params["ln2_g"], params["ln2_b"]], axis=1).astype(jnp.float32)  # (L, 6, E)
    wout = jnp.zeros((E, S_pad), jnp.bfloat16).at[:, :S].set(
        params["wout"].astype(jnp.bfloat16))
    bout = jnp.zeros((1, S_pad), jnp.float32).at[:, :S].set(params["bout"][None, :])
    return {
        "embedding": params["embedding"].astype(jnp.float32),
        "wpe": params["wpe"].astype(jnp.float32),
        "wqkv": wqkv, "w12": w12, "vec": vec, "wout": wout, "bout": bout,
    }


def transformer_forward(input_ids, packed, *, n_layer, n_embd, state_size,
                        batch_tile=None, mode="auto"):
    B, N = input_ids.shape
    E, S, L = n_embd, state_size, n_layer
    S_pad = packed["wout"].shape[1]
    Bt = B if batch_tile is None else max(1, min(batch_tile, B))
    nb = pl.cdiv(B, Bt)
    B_pad = nb * Bt

    # Glue: data-dependent embedding gather + positional add stay in plain JAX.
    x = packed["embedding"][input_ids]                                   # (B, N, E) f32
    h0 = x + packed["wpe"][:N][None, :, :]
    if B_pad != B:
        h0 = jnp.pad(h0, ((0, B_pad - B), (0, 0), (0, 0)))
    h0 = h0.reshape(B_pad * N, E)

    weight_bytes = (packed["wqkv"].size + packed["w12"].size + packed["wout"].size) * 2 \
        + (packed["vec"].size + packed["bout"].size) * 4
    if mode == "auto":
        # Keep all layer weights resident when they comfortably fit; otherwise stream per
        # layer.  (v5e/v6e: larger budget / nb=1 preferred; v7x: keep <=48 MiB, nb>=2.)
        mode = "resident" if weight_bytes <= 8 * 1024 * 1024 else "streamed"

    out_shape = jax.ShapeDtypeStruct((B_pad * N, S_pad), jnp.float32)

    if mode == "resident":
        kern = partial(resident_kernel, L, E, Bt, N)
        in_specs = [
            pl.BlockSpec((Bt * N, E), lambda bb: (bb, 0)),               # init hidden (x+wpe)
            pl.BlockSpec((L, E, 3 * E), lambda bb: (0, 0, 0)),           # fused QKV weights
            pl.BlockSpec((L, 2, E, E), lambda bb: (0, 0, 0, 0)),         # MLP weights
            pl.BlockSpec((L, 6, E), lambda bb: (0, 0, 0)),               # LN / bias vectors
            pl.BlockSpec((E, S_pad), lambda bb: (0, 0)),                 # output weight (padded)
            pl.BlockSpec((1, S_pad), lambda bb: (0, 0)),                 # output bias   (padded)
        ]
        out = pl.pallas_call(
            kern,
            out_shape=out_shape,
            grid=(nb,),
            in_specs=in_specs,
            out_specs=pl.BlockSpec((Bt * N, S_pad), lambda bb: (bb, 0)),
            compiler_params=pltpu.CompilerParams(
                dimension_semantics=("parallel",),
                vmem_limit_bytes=48 * 1024 * 1024),
        )(h0, packed["wqkv"], packed["w12"], packed["vec"], packed["wout"], packed["bout"])
    else:
        kern = partial(streamed_kernel, L, E, Bt, N)
        in_specs = [
            pl.BlockSpec((Bt * N, E), lambda bb, l: (bb, 0)),            # init hidden (x+wpe)
            pl.BlockSpec((None, E, 3 * E), lambda bb, l: (l, 0, 0)),     # layer-l QKV (streamed)
            pl.BlockSpec((None, 2, E, E), lambda bb, l: (l, 0, 0, 0)),   # layer-l MLP (streamed)
            pl.BlockSpec((None, 6, E), lambda bb, l: (l, 0, 0)),         # layer-l vectors
            pl.BlockSpec((E, S_pad), lambda bb, l: (0, 0)),              # output weight (padded)
            pl.BlockSpec((1, S_pad), lambda bb, l: (0, 0)),              # output bias   (padded)
        ]
        out = pl.pallas_call(
            kern,
            out_shape=out_shape,
            grid=(nb, L),
            in_specs=in_specs,
            out_specs=pl.BlockSpec((Bt * N, S_pad), lambda bb, l: (bb, 0)),
            scratch_shapes=[pltpu.VMEM((Bt * N, E), jnp.float32)],       # hidden-state carry
            compiler_params=pltpu.CompilerParams(
                dimension_semantics=("parallel", "arbitrary"),
                vmem_limit_bytes=48 * 1024 * 1024),
        )(h0, packed["wqkv"], packed["w12"], packed["vec"], packed["wout"], packed["bout"])

    return out.reshape(B_pad, N, S_pad)[:B, :, :S]


def reference_forward(input_ids, params, *, n_layer, n_embd, state_size):
    """Pure-JAX f32 reference mirroring the PyTorch forward (for correctness check)."""
    B, N = input_ids.shape
    h = params["embedding"][input_ids] + params["wpe"][:N][None]
    row = jnp.arange(N)[:, None]
    col = jnp.arange(N)[None, :]
    cmask = jnp.where(col <= row, 1.0, -jnp.inf).astype(jnp.float32)   # +1.0 on allowed, as in PyTorch
    for l in range(n_layer):
        q = h @ params["wq"][l]
        k = h @ params["wk"][l]
        v = h @ params["wv"][l]
        scores = q @ jnp.swapaxes(k, -1, -2) / math.sqrt(n_embd) + cmask[None]
        attn = jax.nn.softmax(scores, axis=-1)
        h = h + attn @ v
        h = _layernorm(h, params["ln1_g"][l], params["ln1_b"][l])
        hid = jax.nn.relu(h @ params["w1"][l] + params["b1"][l])
        h = h + hid @ params["w2"][l] + params["b2"][l]
        h = _layernorm(h, params["ln2_g"][l], params["ln2_b"][l])
    return h @ params["wout"] + params["bout"]


def init_params(key, *, state_size, n_positions, n_embd, n_layer):
    E, L, S = n_embd, n_layer, state_size
    keys = jax.random.split(key, 11)
    scale = 0.02
    return {
        "embedding": jax.random.normal(keys[0], (S, E), jnp.float32),
        "wpe": jax.random.normal(keys[1], (n_positions, E), jnp.float32) * scale,
        "wq": jax.random.normal(keys[2], (L, E, E), jnp.float32) * scale,
        "wk": jax.random.normal(keys[3], (L, E, E), jnp.float32) * scale,
        "wv": jax.random.normal(keys[4], (L, E, E), jnp.float32) * scale,
        "ln1_g": jnp.ones((L, E), jnp.float32),
        "ln1_b": jnp.zeros((L, E), jnp.float32),
        "w1": jax.random.normal(keys[5], (L, E, E), jnp.float32) * scale,
        "b1": jax.random.normal(keys[6], (L, E), jnp.float32) * scale,
        "w2": jax.random.normal(keys[7], (L, E, E), jnp.float32) * scale,
        "b2": jax.random.normal(keys[8], (L, E), jnp.float32) * scale,
        "ln2_g": jnp.ones((L, E), jnp.float32),
        "ln2_b": jnp.zeros((L, E), jnp.float32),
        "wout": jax.random.normal(keys[9], (E, S), jnp.float32) * scale,
        "bout": jax.random.normal(keys[10], (S,), jnp.float32) * scale,
    }


if __name__ == "__main__":
    # Small config consistent with the module's constructor.
    # NOTE: the reference PyTorch backbone ignores n_head (single-head over full E); we match it.
    config = dict(state_size=16, n_positions=16, n_embd=32, n_layer=2, n_head=4,
                  dropout=0.0, activation="relu")
    B, N = 2, 8

    key = jax.random.PRNGKey(0)
    pkey, dkey = jax.random.split(key)
    params = init_params(pkey, state_size=config["state_size"],
                         n_positions=config["n_positions"],
                         n_embd=config["n_embd"], n_layer=config["n_layer"])
    input_ids = jax.random.randint(dkey, (B, N), 0, config["state_size"], dtype=jnp.int32)

    # One-time parameter packing (hoisted out of the per-call forward).
    packed = pack_params(params, n_embd=config["n_embd"], state_size=config["state_size"])

    ref = reference_forward(input_ids, params,
                            n_layer=config["n_layer"],
                            n_embd=config["n_embd"],
                            state_size=config["state_size"])

    # Auto mode -> layer-resident kernel (all weights fit in VMEM at this config).
    logits = transformer_forward(input_ids, packed,
                                 n_layer=config["n_layer"],
                                 n_embd=config["n_embd"],
                                 state_size=config["state_size"])
    logits = jax.block_until_ready(logits)
    assert logits.shape == (B, N, config["state_size"])
    # bf16 matmuls + approx reciprocal vs f32 reference -> loose but meaningful tolerance.
    assert jnp.allclose(logits, ref, rtol=2e-2, atol=2e-2), "resident-mode mismatch vs reference"

    # Also exercise the weight-streaming path (used when layer weights exceed the VMEM budget).
    logits_s = transformer_forward(input_ids, packed,
                                   n_layer=config["n_layer"],
                                   n_embd=config["n_embd"],
                                   state_size=config["state_size"],
                                   batch_tile=1, mode="streamed")
    logits_s = jax.block_until_ready(logits_s)
    assert jnp.allclose(logits_s, ref, rtol=2e-2, atol=2e-2), "streamed-mode mismatch vs reference"

    print("KERNEL_OK")
</pallas_src>

<mosaic_0001>
module attributes {stable_mosaic.version = 11 : i64} {
  func.func @resident_kernel(%arg0: i32, %arg1: memref<16x32xf32, #tpu.memory_space<vmem>>, %arg2: memref<2x32x96xbf16, #tpu.memory_space<vmem>>, %arg3: memref<2x2x32x32xbf16, #tpu.memory_space<vmem>>, %arg4: memref<2x6x32xf32, #tpu.memory_space<vmem>>, %arg5: memref<32x128xbf16, #tpu.memory_space<vmem>>, %arg6: memref<1x128xf32, #tpu.memory_space<vmem>>, %arg7: memref<16x128xf32, #tpu.memory_space<vmem>>) attributes {dimension_semantics = [#tpu.dimension_semantics<parallel>], iteration_bounds = array<i64: 1>, scalar_prefetch = 0 : i64, scratch_operands = 0 : i64, tpu.core_type = #tpu.core_type<tc>, window_params = [{transform_indices = @transform_0, window_bounds = array<i64: 16, 32>}, {pipeline_mode = #tpu.pipeline_mode<synchronous>, transform_indices = @transform_1, window_bounds = array<i64: 2, 32, 96>}, {pipeline_mode = #tpu.pipeline_mode<synchronous>, transform_indices = @transform_2, window_bounds = array<i64: 2, 2, 32, 32>}, {pipeline_mode = #tpu.pipeline_mode<synchronous>, transform_indices = @transform_3, window_bounds = array<i64: 2, 6, 32>}, {pipeline_mode = #tpu.pipeline_mode<synchronous>, transform_indices = @transform_4, window_bounds = array<i64: 32, 128>}, {pipeline_mode = #tpu.pipeline_mode<synchronous>, transform_indices = @transform_5, window_bounds = array<i64: 1, 128>}, {transform_indices = @transform_6, window_bounds = array<i64: 16, 128>}]} {
    %0 = tpu.iota {dimensions = array<i32: 0>} : vector<8x8xi32>
    %1 = tpu.iota {dimensions = array<i32: 1>} : vector<8x8xi32>
    %2 = arith.cmpi sle, %1, %0 : vector<8x8xi32>
    %c0 = arith.constant 0 : index
    %c0_0 = arith.constant 0 : index
    %3 = vector.load %arg1[%c0, %c0_0] : memref<16x32xf32, #tpu.memory_space<vmem>>, vector<16x32xf32>
    %c0_i32 = arith.constant 0 : i32
    %4 = arith.index_cast %c0_i32 : i32 to index
    %c0_1 = arith.constant 0 : index
    %c0_2 = arith.constant 0 : index
    %c0_3 = arith.constant 0 : index
    %5 = vector.load %arg3[%4, %c0_1, %c0_2, %c0_3] : memref<2x2x32x32xbf16, #tpu.memory_space<vmem>>, vector<1x2x32x32xbf16>
    %6 = vector.shape_cast %5 : vector<1x2x32x32xbf16> to vector<2x32x32xbf16>
    %7 = arith.index_cast %c0_i32 : i32 to index
    %c0_4 = arith.constant 0 : index
    %c0_5 = arith.constant 0 : index
    %8 = vector.load %arg2[%7, %c0_4, %c0_5] : memref<2x32x96xbf16, #tpu.memory_space<vmem>>, vector<1x32x96xbf16>
    %9 = vector.shape_cast %8 : vector<1x32x96xbf16> to vector<32x96xbf16>
    %10 = vector.extract_strided_slice %6 {offsets = [0, 0, 0], sizes = [1, 32, 32], strides = [1, 1, 1]} : vector<2x32x32xbf16> to vector<1x32x32xbf16>
    %11 = vector.shape_cast %10 : vector<1x32x32xbf16> to vector<32x32xbf16>
    %12 = vector.extract_strided_slice %6 {offsets = [1, 0, 0], sizes = [1, 32, 32], strides = [1, 1, 1]} : vector<2x32x32xbf16> to vector<1x32x32xbf16>
    %13 = vector.shape_cast %12 : vector<1x32x32xbf16> to vector<32x32xbf16>
    %14 = arith.index_cast %c0_i32 : i32 to index
    %c0_6 = arith.constant 0 : index
    %c0_7 = arith.constant 0 : index
    %15 = vector.load %arg4[%14, %c0_6, %c0_7] : memref<2x6x32xf32, #tpu.memory_space<vmem>>, vector<1x6x32xf32>
    %16 = vector.shape_cast %15 : vector<1x6x32xf32> to vector<6x32xf32>
    %17 = arith.truncf %3 : vector<16x32xf32> to vector<16x32xbf16>
    %18 = vector.extract_strided_slice %16 {offsets = [0, 0], sizes = [1, 32], strides = [1, 1]} : vector<6x32xf32> to vector<1x32xf32>
    %19 = vector.extract_strided_slice %16 {offsets = [1, 0], sizes = [1, 32], strides = [1, 1]} : vector<6x32xf32> to vector<1x32xf32>
    %20 = vector.extract_strided_slice %16 {offsets = [2, 0], sizes = [1, 32], strides = [1, 1]} : vector<6x32xf32> to vector<1x32xf32>
    %21 = vector.extract_strided_slice %16 {offsets = [3, 0], sizes = [1, 32], strides = [1, 1]} : vector<6x32xf32> to vector<1x32xf32>
    %22 = vector.extract_strided_slice %16 {offsets = [4, 0], sizes = [1, 32], strides = [1, 1]} : vector<6x32xf32> to vector<1x32xf32>
    %23 = vector.extract_strided_slice %16 {offsets = [5, 0], sizes = [1, 32], strides = [1, 1]} : vector<6x32xf32> to vector<1x32xf32>
    %cst = arith.constant dense<0.000000e+00> : vector<16x96xf32>
    %24 = tpu.matmul %17, %9, %cst {dimension_numbers = #tpu.dot_dimension_numbers<[1], [0], [0], [1], [0, 0, 1, 1], [], []>} : vector<16x32xbf16>, vector<32x96xbf16>, vector<16x96xf32> -> vector<16x96xf32>
    %25 = vector.extract_strided_slice %24 {offsets = [0, 0], sizes = [16, 32], strides = [1, 1]} : vector<16x96xf32> to vector<16x32xf32>
    %cst_8 = arith.constant 0.176776692 : f32
    %26 = vector.broadcast %cst_8 : f32 to vector<16x32xf32>
    %27 = arith.mulf %25, %26 : vector<16x32xf32>
    %28 = vector.extract_strided_slice %24 {offsets = [0, 32], sizes = [16, 32], strides = [1, 1]} : vector<16x96xf32> to vector<16x32xf32>
    %29 = vector.extract_strided_slice %24 {offsets = [0, 64], sizes = [16, 32], strides = [1, 1]} : vector<16x96xf32> to vector<16x32xf32>
    %30 = vector.shape_cast %27 : vector<16x32xf32> to vector<2x8x32xf32>
    %31 = arith.truncf %30 : vector<2x8x32xf32> to vector<2x8x32xbf16>
    %32 = vector.shape_cast %28 : vector<16x32xf32> to vector<2x8x32xf32>
    %33 = arith.truncf %32 : vector<2x8x32xf32> to vector<2x8x32xbf16>
    %34 = vector.shape_cast %29 : vector<16x32xf32> to vector<2x8x32xf32>
    %35 = arith.truncf %34 : vector<2x8x32xf32> to vector<2x8x32xbf16>
    "tpu.trace_start"() <{level = 10 : i32, message = "bqd,bkd->bqk"}> : () -> ()
    %cst_9 = arith.constant dense<0.000000e+00> : vector<2x8x8xf32>
    %36 = tpu.matmul %31, %33, %cst_9 {dimension_numbers = #tpu.dot_dimension_numbers<[2], [2], [1], [1], [0, 0, 0, 1, 1, 1], [0], [0]>} : vector<2x8x32xbf16>, vector<2x8x32xbf16>, vector<2x8x8xf32> -> vector<2x8x8xf32>
    "tpu.trace_stop"() : () -> ()
    %37 = vector.shape_cast %2 : vector<8x8xi1> to vector<1x8x8xi1>
    %cst_10 = arith.constant 0xFF800000 : f32
    %38 = vector.shape_cast %37 : vector<1x8x8xi1> to vector<1x8x8xi1>
    %39 = vector.broadcast %38 : vector<1x8x8xi1> to vector<2x8x8xi1>
    %40 = vector.broadcast %cst_10 : f32 to vector<2x8x8xf32>
    %41 = arith.select %39, %36, %40 : vector<2x8x8xi1>, vector<2x8x8xf32>
    %cst_11 = arith.constant dense<0xFF800000> : vector<2x8xf32>
    %42 = vector.multi_reduction <maximumf>, %41, %cst_11 [2] : vector<2x8x8xf32> to vector<2x8xf32>
    %43 = vector.shape_cast %42 : vector<2x8xf32> to vector<2x8x1xf32>
    %44 = vector.broadcast %43 : vector<2x8x1xf32> to vector<2x8x8xf32>
    %45 = arith.subf %41, %44 : vector<2x8x8xf32>
    %46 = math.exp %45 : vector<2x8x8xf32>
    %cst_12 = arith.constant dense<0.000000e+00> : vector<2x8xf32>
    %47 = vector.multi_reduction <add>, %46, %cst_12 [2] : vector<2x8x8xf32> to vector<2x8xf32>
    %48 = vector.shape_cast %47 : vector<2x8xf32> to vector<2x8x1xf32>
    %49 = tpu.reciprocal %48 {approx = true} : vector<2x8x1xf32> -> vector<2x8x1xf32>
    %50 = vector.broadcast %49 : vector<2x8x1xf32> to vector<2x8x8xf32>
    %51 = arith.mulf %46, %50 : vector<2x8x8xf32>
    %52 = arith.truncf %51 : vector<2x8x8xf32> to vector<2x8x8xbf16>
    "tpu.trace_start"() <{level = 10 : i32, message = "bqk,bkd->bqd"}> : () -> ()
    %cst_13 = arith.constant dense<0.000000e+00> : vector<2x8x32xf32>
    %53 = tpu.matmul %52, %35, %cst_13 {dimension_numbers = #tpu.dot_dimension_numbers<[2], [1], [1], [2], [0, 0, 0, 1, 1, 2], [0], [0]>} : vector<2x8x8xbf16>, vector<2x8x32xbf16>, vector<2x8x32xf32> -> vector<2x8x32xf32>
    "tpu.trace_stop"() : () -> ()
    %54 = vector.shape_cast %53 : vector<2x8x32xf32> to vector<16x32xf32>
    %55 = arith.addf %3, %54 : vector<16x32xf32>
    %cst_14 = arith.constant dense<0.000000e+00> : vector<16xf32>
    %56 = vector.multi_reduction <add>, %55, %cst_14 [1] : vector<16x32xf32> to vector<16xf32>
    %57 = vector.shape_cast %56 : vector<16xf32> to vector<16x1xf32>
    %cst_15 = arith.constant 3.200000e+01 : f32
    %58 = vector.broadcast %cst_15 : f32 to vector<16x1xf32>
    %59 = arith.divf %57, %58 : vector<16x1xf32>
    %60 = vector.broadcast %59 : vector<16x1xf32> to vector<16x32xf32>
    %61 = arith.subf %55, %60 : vector<16x32xf32>
    %62 = arith.mulf %61, %61 : vector<16x32xf32>
    %cst_16 = arith.constant dense<0.000000e+00> : vector<16xf32>
    %63 = vector.multi_reduction <add>, %62, %cst_16 [1] : vector<16x32xf32> to vector<16xf32>
    %64 = vector.shape_cast %63 : vector<16xf32> to vector<16x1xf32>
    %cst_17 = arith.constant 3.200000e+01 : f32
    %65 = vector.broadcast %cst_17 : f32 to vector<16x1xf32>
    %66 = arith.divf %64, %65 : vector<16x1xf32>
    %67 = vector.broadcast %59 : vector<16x1xf32> to vector<16x32xf32>
    %68 = arith.subf %55, %67 : vector<16x32xf32>
    %cst_18 = arith.constant 9.99999974E-6 : f32
    %69 = vector.broadcast %cst_18 : f32 to vector<16x1xf32>
    %70 = arith.addf %66, %69 : vector<16x1xf32>
    %71 = math.rsqrt %70 : vector<16x1xf32>
    %72 = vector.broadcast %71 : vector<16x1xf32> to vector<16x32xf32>
    %73 = arith.mulf %68, %72 : vector<16x32xf32>
    %74 = vector.broadcast %18 : vector<1x32xf32> to vector<16x32xf32>
    %75 = arith.mulf %73, %74 : vector<16x32xf32>
    %76 = vector.broadcast %19 : vector<1x32xf32> to vector<16x32xf32>
    %77 = arith.addf %75, %76 : vector<16x32xf32>
    %78 = arith.truncf %77 : vector<16x32xf32> to vector<16x32xbf16>
    %cst_19 = arith.constant dense<0.000000e+00> : vector<16x32xf32>
    %79 = tpu.matmul %78, %11, %cst_19 {dimension_numbers = #tpu.dot_dimension_numbers<[1], [0], [0], [1], [0, 0, 1, 1], [], []>} : vector<16x32xbf16>, vector<32x32xbf16>, vector<16x32xf32> -> vector<16x32xf32>
    %80 = vector.broadcast %20 : vector<1x32xf32> to vector<16x32xf32>
    %81 = arith.addf %79, %80 : vector<16x32xf32>
    %cst_20 = arith.constant 0.000000e+00 : f32
    %82 = vector.broadcast %cst_20 : f32 to vector<16x32xf32>
    %83 = arith.maximumf %81, %82 : vector<16x32xf32>
    %84 = arith.truncf %83 : vector<16x32xf32> to vector<16x32xbf16>
    %cst_21 = arith.constant dense<0.000000e+00> : vector<16x32xf32>
    %85 = tpu.matmul %84, %13, %cst_21 {dimension_numbers = #tpu.dot_dimension_numbers<[1], [0], [0], [1], [0, 0, 1, 1], [], []>} : vector<16x32xbf16>, vector<32x32xbf16>, vector<16x32xf32> -> vector<16x32xf32>
    %86 = arith.addf %77, %85 : vector<16x32xf32>
    %87 = vector.broadcast %21 : vector<1x32xf32> to vector<16x32xf32>
    %88 = arith.addf %86, %87 : vector<16x32xf32>
    %cst_22 = arith.constant dense<0.000000e+00> : vector<16xf32>
    %89 = vector.multi_reduction <add>, %88, %cst_22 [1] : vector<16x32xf32> to vector<16xf32>
    %90 = vector.shape_cast %89 : vector<16xf32> to vector<16x1xf32>
    %cst_23 = arith.constant 3.200000e+01 : f32
    %91 = vector.broadcast %cst_23 : f32 to vector<16x1xf32>
    %92 = arith.divf %90, %91 : vector<16x1xf32>
    %93 = vector.broadcast %92 : vector<16x1xf32> to vector<16x32xf32>
    %94 = arith.subf %88, %93 : vector<16x32xf32>
    %95 = arith.mulf %94, %94 : vector<16x32xf32>
    %cst_24 = arith.constant dense<0.000000e+00> : vector<16xf32>
    %96 = vector.multi_reduction <add>, %95, %cst_24 [1] : vector<16x32xf32> to vector<16xf32>
    %97 = vector.shape_cast %96 : vector<16xf32> to vector<16x1xf32>
    %cst_25 = arith.constant 3.200000e+01 : f32
    %98 = vector.broadcast %cst_25 : f32 to vector<16x1xf32>
    %99 = arith.divf %97, %98 : vector<16x1xf32>
    %100 = vector.broadcast %92 : vector<16x1xf32> to vector<16x32xf32>
    %101 = arith.subf %88, %100 : vector<16x32xf32>
    %cst_26 = arith.constant 9.99999974E-6 : f32
    %102 = vector.broadcast %cst_26 : f32 to vector<16x1xf32>
    %103 = arith.addf %99, %102 : vector<16x1xf32>
    %104 = math.rsqrt %103 : vector<16x1xf32>
    %105 = vector.broadcast %104 : vector<16x1xf32> to vector<16x32xf32>
    %106 = arith.mulf %101, %105 : vector<16x32xf32>
    %107 = vector.broadcast %22 : vector<1x32xf32> to vector<16x32xf32>
    %108 = arith.mulf %106, %107 : vector<16x32xf32>
    %109 = vector.broadcast %23 : vector<1x32xf32> to vector<16x32xf32>
    %110 = arith.addf %108, %109 : vector<16x32xf32>
    %c1_i32 = arith.constant 1 : i32
    %111 = arith.index_cast %c1_i32 : i32 to index
    %c0_27 = arith.constant 0 : index
    %c0_28 = arith.constant 0 : index
    %c0_29 = arith.constant 0 : index
    %112 = vector.load %arg3[%111, %c0_27, %c0_28, %c0_29] : memref<2x2x32x32xbf16, #tpu.memory_space<vmem>>, vector<1x2x32x32xbf16>
    %113 = vector.shape_cast %112 : vector<1x2x32x32xbf16> to vector<2x32x32xbf16>
    %114 = arith.index_cast %c1_i32 : i32 to index
    %c0_30 = arith.constant 0 : index
    %c0_31 = arith.constant 0 : index
    %115 = vector.load %arg2[%114, %c0_30, %c0_31] : memref<2x32x96xbf16, #tpu.memory_space<vmem>>, vector<1x32x96xbf16>
    %116 = vector.shape_cast %115 : vector<1x32x96xbf16> to vector<32x96xbf16>
    %117 = vector.extract_strided_slice %113 {offsets = [0, 0, 0], sizes = [1, 32, 32], strides = [1, 1, 1]} : vector<2x32x32xbf16> to vector<1x32x32xbf16>
    %118 = vector.shape_cast %117 : vector<1x32x32xbf16> to vector<32x32xbf16>
    %119 = vector.extract_strided_slice %113 {offsets = [1, 0, 0], sizes = [1, 32, 32], strides = [1, 1, 1]} : vector<2x32x32xbf16> to vector<1x32x32xbf16>
    %120 = vector.shape_cast %119 : vector<1x32x32xbf16> to vector<32x32xbf16>
    %121 = arith.index_cast %c1_i32 : i32 to index
    %c0_32 = arith.constant 0 : index
    %c0_33 = arith.constant 0 : index
    %122 = vector.load %arg4[%121, %c0_32, %c0_33] : memref<2x6x32xf32, #tpu.memory_space<vmem>>, vector<1x6x32xf32>
    %123 = vector.shape_cast %122 : vector<1x6x32xf32> to vector<6x32xf32>
    %124 = arith.truncf %110 : vector<16x32xf32> to vector<16x32xbf16>
    %125 = vector.extract_strided_slice %123 {offsets = [0, 0], sizes = [1, 32], strides = [1, 1]} : vector<6x32xf32> to vector<1x32xf32>
    %126 = vector.extract_strided_slice %123 {offsets = [1, 0], sizes = [1, 32], strides = [1, 1]} : vector<6x32xf32> to vector<1x32xf32>
    %127 = vector.extract_strided_slice %123 {offsets = [2, 0], sizes = [1, 32], strides = [1, 1]} : vector<6x32xf32> to vector<1x32xf32>
    %128 = vector.extract_strided_slice %123 {offsets = [3, 0], sizes = [1, 32], strides = [1, 1]} : vector<6x32xf32> to vector<1x32xf32>
    %129 = vector.extract_strided_slice %123 {offsets = [4, 0], sizes = [1, 32], strides = [1, 1]} : vector<6x32xf32> to vector<1x32xf32>
    %130 = vector.extract_strided_slice %123 {offsets = [5, 0], sizes = [1, 32], strides = [1, 1]} : vector<6x32xf32> to vector<1x32xf32>
    %cst_34 = arith.constant dense<0.000000e+00> : vector<16x96xf32>
    %131 = tpu.matmul %124, %116, %cst_34 {dimension_numbers = #tpu.dot_dimension_numbers<[1], [0], [0], [1], [0, 0, 1, 1], [], []>} : vector<16x32xbf16>, vector<32x96xbf16>, vector<16x96xf32> -> vector<16x96xf32>
    %132 = vector.extract_strided_slice %131 {offsets = [0, 0], sizes = [16, 32], strides = [1, 1]} : vector<16x96xf32> to vector<16x32xf32>
    %cst_35 = arith.constant 0.176776692 : f32
    %133 = vector.broadcast %cst_35 : f32 to vector<16x32xf32>
    %134 = arith.mulf %132, %133 : vector<16x32xf32>
    %135 = vector.extract_strided_slice %131 {offsets = [0, 32], sizes = [16, 32], strides = [1, 1]} : vector<16x96xf32> to vector<16x32xf32>
    %136 = vector.extract_strided_slice %131 {offsets = [0, 64], sizes = [16, 32], strides = [1, 1]} : vector<16x96xf32> to vector<16x32xf32>
    %137 = vector.shape_cast %134 : vector<16x32xf32> to vector<2x8x32xf32>
    %138 = arith.truncf %137 : vector<2x8x32xf32> to vector<2x8x32xbf16>
    %139 = vector.shape_cast %135 : vector<16x32xf32> to vector<2x8x32xf32>
    %140 = arith.truncf %139 : vector<2x8x32xf32> to vector<2x8x32xbf16>
    %141 = vector.shape_cast %136 : vector<16x32xf32> to vector<2x8x32xf32>
    %142 = arith.truncf %141 : vector<2x8x32xf32> to vector<2x8x32xbf16>
    "tpu.trace_start"() <{level = 10 : i32, message = "bqd,bkd->bqk"}> : () -> ()
    %cst_36 = arith.constant dense<0.000000e+00> : vector<2x8x8xf32>
    %143 = tpu.matmul %138, %140, %cst_36 {dimension_numbers = #tpu.dot_dimension_numbers<[2], [2], [1], [1], [0, 0, 0, 1, 1, 1], [0], [0]>} : vector<2x8x32xbf16>, vector<2x8x32xbf16>, vector<2x8x8xf32> -> vector<2x8x8xf32>
    "tpu.trace_stop"() : () -> ()
    %144 = vector.shape_cast %2 : vector<8x8xi1> to vector<1x8x8xi1>
    %cst_37 = arith.constant 0xFF800000 : f32
    %145 = vector.shape_cast %144 : vector<1x8x8xi1> to vector<1x8x8xi1>
    %146 = vector.broadcast %145 : vector<1x8x8xi1> to vector<2x8x8xi1>
    %147 = vector.broadcast %cst_37 : f32 to vector<2x8x8xf32>
    %148 = arith.select %146, %143, %147 : vector<2x8x8xi1>, vector<2x8x8xf32>
    %cst_38 = arith.constant dense<0xFF800000> : vector<2x8xf32>
    %149 = vector.multi_reduction <maximumf>, %148, %cst_38 [2] : vector<2x8x8xf32> to vector<2x8xf32>
    %150 = vector.shape_cast %149 : vector<2x8xf32> to vector<2x8x1xf32>
    %151 = vector.broadcast %150 : vector<2x8x1xf32> to vector<2x8x8xf32>
    %152 = arith.subf %148, %151 : vector<2x8x8xf32>
    %153 = math.exp %152 : vector<2x8x8xf32>
    %cst_39 = arith.constant dense<0.000000e+00> : vector<2x8xf32>
    %154 = vector.multi_reduction <add>, %153, %cst_39 [2] : vector<2x8x8xf32> to vector<2x8xf32>
    %155 = vector.shape_cast %154 : vector<2x8xf32> to vector<2x8x1xf32>
    %156 = tpu.reciprocal %155 {approx = true} : vector<2x8x1xf32> -> vector<2x8x1xf32>
    %157 = vector.broadcast %156 : vector<2x8x1xf32> to vector<2x8x8xf32>
    %158 = arith.mulf %153, %157 : vector<2x8x8xf32>
    %159 = arith.truncf %158 : vector<2x8x8xf32> to vector<2x8x8xbf16>
    "tpu.trace_start"() <{level = 10 : i32, message = "bqk,bkd->bqd"}> : () -> ()
    %cst_40 = arith.constant dense<0.000000e+00> : vector<2x8x32xf32>
    %160 = tpu.matmul %159, %142, %cst_40 {dimension_numbers = #tpu.dot_dimension_numbers<[2], [1], [1], [2], [0, 0, 0, 1, 1, 2], [0], [0]>} : vector<2x8x8xbf16>, vector<2x8x32xbf16>, vector<2x8x32xf32> -> vector<2x8x32xf32>
    "tpu.trace_stop"() : () -> ()
    %161 = vector.shape_cast %160 : vector<2x8x32xf32> to vector<16x32xf32>
    %162 = arith.addf %110, %161 : vector<16x32xf32>
    %cst_41 = arith.constant dense<0.000000e+00> : vector<16xf32>
    %163 = vector.multi_reduction <add>, %162, %cst_41 [1] : vector<16x32xf32> to vector<16xf32>
    %164 = vector.shape_cast %163 : vector<16xf32> to vector<16x1xf32>
    %cst_42 = arith.constant 3.200000e+01 : f32
    %165 = vector.broadcast %cst_42 : f32 to vector<16x1xf32>
    %166 = arith.divf %164, %165 : vector<16x1xf32>
    %167 = vector.broadcast %166 : vector<16x1xf32> to vector<16x32xf32>
    %168 = arith.subf %162, %167 : vector<16x32xf32>
    %169 = arith.mulf %168, %168 : vector<16x32xf32>
    %cst_43 = arith.constant dense<0.000000e+00> : vector<16xf32>
    %170 = vector.multi_reduction <add>, %169, %cst_43 [1] : vector<16x32xf32> to vector<16xf32>
    %171 = vector.shape_cast %170 : vector<16xf32> to vector<16x1xf32>
    %cst_44 = arith.constant 3.200000e+01 : f32
    %172 = vector.broadcast %cst_44 : f32 to vector<16x1xf32>
    %173 = arith.divf %171, %172 : vector<16x1xf32>
    %174 = vector.broadcast %166 : vector<16x1xf32> to vector<16x32xf32>
    %175 = arith.subf %162, %174 : vector<16x32xf32>
    %cst_45 = arith.constant 9.99999974E-6 : f32
    %176 = vector.broadcast %cst_45 : f32 to vector<16x1xf32>
    %177 = arith.addf %173, %176 : vector<16x1xf32>
    %178 = math.rsqrt %177 : vector<16x1xf32>
    %179 = vector.broadcast %178 : vector<16x1xf32> to vector<16x32xf32>
    %180 = arith.mulf %175, %179 : vector<16x32xf32>
    %181 = vector.broadcast %125 : vector<1x32xf32> to vector<16x32xf32>
    %182 = arith.mulf %180, %181 : vector<16x32xf32>
    %183 = vector.broadcast %126 : vector<1x32xf32> to vector<16x32xf32>
    %184 = arith.addf %182, %183 : vector<16x32xf32>
    %185 = arith.truncf %184 : vector<16x32xf32> to vector<16x32xbf16>
    %cst_46 = arith.constant dense<0.000000e+00> : vector<16x32xf32>
    %186 = tpu.matmul %185, %118, %cst_46 {dimension_numbers = #tpu.dot_dimension_numbers<[1], [0], [0], [1], [0, 0, 1, 1], [], []>} : vector<16x32xbf16>, vector<32x32xbf16>, vector<16x32xf32> -> vector<16x32xf32>
    %187 = vector.broadcast %127 : vector<1x32xf32> to vector<16x32xf32>
    %188 = arith.addf %186, %187 : vector<16x32xf32>
    %cst_47 = arith.constant 0.000000e+00 : f32
    %189 = vector.broadcast %cst_47 : f32 to vector<16x32xf32>
    %190 = arith.maximumf %188, %189 : vector<16x32xf32>
    %191 = arith.truncf %190 : vector<16x32xf32> to vector<16x32xbf16>
    %cst_48 = arith.constant dense<0.000000e+00> : vector<16x32xf32>
    %192 = tpu.matmul %191, %120, %cst_48 {dimension_numbers = #tpu.dot_dimension_numbers<[1], [0], [0], [1], [0, 0, 1, 1], [], []>} : vector<16x32xbf16>, vector<32x32xbf16>, vector<16x32xf32> -> vector<16x32xf32>
    %193 = arith.addf %184, %192 : vector<16x32xf32>
    %194 = vector.broadcast %128 : vector<1x32xf32> to vector<16x32xf32>
    %195 = arith.addf %193, %194 : vector<16x32xf32>
    %cst_49 = arith.constant dense<0.000000e+00> : vector<16xf32>
    %196 = vector.multi_reduction <add>, %195, %cst_49 [1] : vector<16x32xf32> to vector<16xf32>
    %197 = vector.shape_cast %196 : vector<16xf32> to vector<16x1xf32>
    %cst_50 = arith.constant 3.200000e+01 : f32
    %198 = vector.broadcast %cst_50 : f32 to vector<16x1xf32>
    %199 = arith.divf %197, %198 : vector<16x1xf32>
    %200 = vector.broadcast %199 : vector<16x1xf32> to vector<16x32xf32>
    %201 = arith.subf %195, %200 : vector<16x32xf32>
    %202 = arith.mulf %201, %201 : vector<16x32xf32>
    %cst_51 = arith.constant dense<0.000000e+00> : vector<16xf32>
    %203 = vector.multi_reduction <add>, %202, %cst_51 [1] : vector<16x32xf32> to vector<16xf32>
    %204 = vector.shape_cast %203 : vector<16xf32> to vector<16x1xf32>
    %cst_52 = arith.constant 3.200000e+01 : f32
    %205 = vector.broadcast %cst_52 : f32 to vector<16x1xf32>
    %206 = arith.divf %204, %205 : vector<16x1xf32>
    %207 = vector.broadcast %199 : vector<16x1xf32> to vector<16x32xf32>
    %208 = arith.subf %195, %207 : vector<16x32xf32>
    %cst_53 = arith.constant 9.99999974E-6 : f32
    %209 = vector.broadcast %cst_53 : f32 to vector<16x1xf32>
    %210 = arith.addf %206, %209 : vector<16x1xf32>
    %211 = math.rsqrt %210 : vector<16x1xf32>
    %212 = vector.broadcast %211 : vector<16x1xf32> to vector<16x32xf32>
    %213 = arith.mulf %208, %212 : vector<16x32xf32>
    %214 = vector.broadcast %129 : vector<1x32xf32> to vector<16x32xf32>
    %215 = arith.mulf %213, %214 : vector<16x32xf32>
    %216 = vector.broadcast %130 : vector<1x32xf32> to vector<16x32xf32>
    %217 = arith.addf %215, %216 : vector<16x32xf32>
    %c2_i32 = arith.constant 2 : i32
    %218 = arith.truncf %217 : vector<16x32xf32> to vector<16x32xbf16>
    %c0_54 = arith.constant 0 : index
    %c0_55 = arith.constant 0 : index
    %219 = vector.load %arg5[%c0_54, %c0_55] : memref<32x128xbf16, #tpu.memory_space<vmem>>, vector<32x128xbf16>
    %cst_56 = arith.constant dense<0.000000e+00> : vector<16x128xf32>
    %220 = tpu.matmul %218, %219, %cst_56 {dimension_numbers = #tpu.dot_dimension_numbers<[1], [0], [0], [1], [0, 0, 1, 1], [], []>} : vector<16x32xbf16>, vector<32x128xbf16>, vector<16x128xf32> -> vector<16x128xf32>
    %c0_57 = arith.constant 0 : index
    %c0_58 = arith.constant 0 : index
    %221 = vector.load %arg6[%c0_57, %c0_58] : memref<1x128xf32, #tpu.memory_space<vmem>>, vector<1x128xf32>
    %222 = vector.broadcast %221 : vector<1x128xf32> to vector<16x128xf32>
    %223 = arith.addf %220, %222 : vector<16x128xf32>
    %c0_59 = arith.constant 0 : index
    %c0_60 = arith.constant 0 : index
    %224 = vector.load %arg7[%c0_59, %c0_60] : memref<16x128xf32, #tpu.memory_space<vmem>>, vector<16x128xf32>
    tpu.vector_store %arg7[%c0_59, %c0_60], %223 {strides = array<i32>} : memref<16x128xf32, #tpu.memory_space<vmem>>, vector<16x128xf32>,
    return
  }
  func.func @transform_0(%arg0: i32) -> (i32, i32) {
    %c0_i32 = arith.constant 0 : i32
    %c0_i32_0 = arith.constant 0 : i32
    return %arg0, %c0_i32 : i32, i32
  }
  func.func @transform_1(%arg0: i32) -> (i32, i32, i32) {
    %c0_i32 = arith.constant 0 : i32
    %c0_i32_0 = arith.constant 0 : i32
    %c0_i32_1 = arith.constant 0 : i32
    %c0_i32_2 = arith.constant 0 : i32
    return %c0_i32, %c0_i32_0, %c0_i32_1 : i32, i32, i32
  }
  func.func @transform_2(%arg0: i32) -> (i32, i32, i32, i32) {
    %c0_i32 = arith.constant 0 : i32
    %c0_i32_0 = arith.constant 0 : i32
    %c0_i32_1 = arith.constant 0 : i32
    %c0_i32_2 = arith.constant 0 : i32
    %c0_i32_3 = arith.constant 0 : i32
    return %c0_i32, %c0_i32_0, %c0_i32_1, %c0_i32_2 : i32, i32, i32, i32
  }
  func.func @transform_3(%arg0: i32) -> (i32, i32, i32) {
    %c0_i32 = arith.constant 0 : i32
    %c0_i32_0 = arith.constant 0 : i32
    %c0_i32_1 = arith.constant 0 : i32
    %c0_i32_2 = arith.constant 0 : i32
    return %c0_i32, %c0_i32_0, %c0_i32_1 : i32, i32, i32
  }
  func.func @transform_4(%arg0: i32) -> (i32, i32) {
    %c0_i32 = arith.constant 0 : i32
    %c0_i32_0 = arith.constant 0 : i32
    %c0_i32_1 = arith.constant 0 : i32
    return %c0_i32, %c0_i32_0 : i32, i32
  }
  func.func @transform_5(%arg0: i32) -> (i32, i32) {
    %c0_i32 = arith.constant 0 : i32
    %c0_i32_0 = arith.constant 0 : i32
    %c0_i32_1 = arith.constant 0 : i32
    return %c0_i32, %c0_i32_0 : i32, i32
  }
  func.func @transform_6(%arg0: i32) -> (i32, i32) {
    %c0_i32 = arith.constant 0 : i32
    %c0_i32_0 = arith.constant 0 : i32
    return %arg0, %c0_i32 : i32, i32
  }
}

</mosaic_0001>

<bundles_post_ra>
// kernel: tpu_custom_call.1
= control target key start
LH: loop header
LB: loop body
LE: loop exit
PB: predicated region body
PF: predicated region fallthrough
CT: control target
= control target key end

     0   :  { %11 = vsyncpa [#allocation3], 0  ;;  %s1721_s0 = inlined_call_operand.vmem [shape: f32[16,32], index: 0, kind: input, shape index: {}]   ;;  %s1722_s1 = inlined_call_operand.hbm [shape: bf16[2,32,96], index: 1, kind: input, shape index: {}]   ;;  %s1723_s2 = inlined_call_operand.hbm [shape: bf16[2,2,32,32], index: 2, kind: input, shape index: {}]   ;;  %s1724_s3 = inlined_call_operand.vmem [shape: f32[2,6,32], index: 3, kind: input, shape index: {}]   ;;  %s1725_s4 = inlined_call_operand.vmem [shape: bf16[32,128], index: 4, kind: input, shape index: {}]   ;;  %s1726_s5 = inlined_call_operand.vmem [shape: f32[1,128], index: 5, kind: input, shape index: {}]   ;;  %s1727_s6 = inlined_call_operand.hbm [shape: f32[16,128], index: 6, kind: output, shape index: {}]  }
   0x1   :  { %12 = vsyncpa [#allocation6], 0 }
   0x2   :  { %13 = vsyncpa [#allocation4], 0  ;;  %s1455_s21 = smov [#allocation2]  }
   0x3   :  { %s21_s22 = sshll.u32 %s1455_s21, 4  ;;  %s22_s22 = int_to_ptr.vmem [resolvable:$true] %s21_s22 }
   0x4   :  { %s1397_s23 = scalar_lea.vmem %s22_s22, 512  ;;  %p1402_p1 = scmp.lt.s32.totalorder %s22_s22, %s22_s22 }
   0x5   :  { %p1398_p0 = scmp.ne.s32.totalorder %s22_s22, %s1397_s23  ;;  %p1403_p2 = scmp.lt.s32.totalorder %s1397_s23, %s1397_s23 }
   0x7   :  { %p1404_p3 = por %p1403_p2, %p1402_p1 }
   0x9   :  { %p1405_p4 = pnand %p1404_p3, %p1398_p0 }
   0xb   :  { %1408 = shalt.err (!%p1405_p4)
}
   0xc   :  { %s1456_s24 = smov 64   ;;  %s1457_s25 = smov 4  }
   0xd   :  { %27 = dma.hbm_to_vmem [thread:$0]  %s1722_s1, 512, %s22_s22, [#allocation3], %s1456_s24, %s1456_s24, %s1457_s25  }
   0xe   :  { %s1458_s28 = smov [#allocation5]  }
   0xf   :  { %s33_s29 = sshll.u32 %s1458_s28, 4  ;;  %s34_s29 = int_to_ptr.vmem [resolvable:$true] %s33_s29 }
  0x10   :  { %s1417_s30 = scalar_lea.vmem %s34_s29, 1024  ;;  %p1422_p6 = scmp.lt.s32.totalorder %s34_s29, %s34_s29 }
  0x11   :  { %p1418_p5 = scmp.ne.s32.totalorder %s34_s29, %s1417_s30  ;;  %p1423_p7 = scmp.lt.s32.totalorder %s1417_s30, %s1417_s30 }
  0x13   :  { %p1424_p8 = por %p1423_p7, %p1422_p6 }
  0x15   :  { %p1425_p9 = pnand %p1424_p8, %p1418_p5 }
  0x17   :  { %1428 = shalt.err (!%p1425_p9)
}
  0x18   :  { %39 = dma.hbm_to_vmem [thread:$0]  %s1723_s2, 1024, %s34_s29, [#allocation6], %s1456_s24, %s1456_s24, %s1457_s25  }
  0x19   :  { %1449 = dma.done.wait [#allocation3], 512  }
  0x1a   :  { %1450 = vsyncadd [#allocation3], 4294966784 }
  0x1b   :  { %1451 = dma.done.wait [#allocation6], 1024  }
  0x1c   :  { %1452 = vsyncadd [#allocation6], 4294966272  ;;  %v1459_v0 = vmov 0.0   ;;  %vm1460_vm0 = vmmov 0   ;;  %v1343_v1 = vld [vmem:[#allocation2 + $0x8] sm:$0xff]   ;;  %v1344_v2 = vld [vmem:[#allocation2] sm:$0xff]   ;;  %v53_v20 = vlaneseq }
  0x1d   :  { %1229 = vmatprep.subr.bf16.mxu0 %v1459_v0  ;;  %1233 = vmatprep.mubr.msk.bf16.mxu0 %vm1460_vm0, %v1459_v0  ;;  %v1519_v3 = vld [vmem:[%s1721_s0] sm:$0xff]  ;;  %v1524_v4 = vld [vmem:[%s1721_s0 + $0x8] sm:$0xff]  ;;  %vm86_vm1 = vcmask 261120   ;;  %s1461_s11 = smov 96   ;;  %vm239_vm3 = vcmask 64512   ;;  %vm269_vm4 = vcmask 1043456  }
  0x1e   :  { %1237 = vmatprep.subr.bf16.mxu1 %v1459_v0  ;;  %1239 = vmatprep.mubr.msk.bf16.mxu1 %vm1460_vm0, %v1459_v0  ;;  %v73_v5 = vpack.c.bf16 %v1524_v4, %v1519_v3  ;;  %v1545_v21 = vshrl.u32 %v53_v20, 7  ;;  %v1547_v22 = vand.u32 127, %v53_v20  ;;  %s1462_s19 = smov [#allocation7]  }
  0x1f   :  { %1230 = vmatpush3.bf16.msra.mxu0 %v1343_v1  ;;  %s1148_s20 = sshll.u32 %s1462_s19, 4  ;;  %s1149_s20 = int_to_ptr.vmem [resolvable:$true] %s1148_s20 }
  0x20   :  { %1231 = vmatprep.subr.bf16.mxu0 %v1459_v0  ;;  %vm57_vm2 = vcmp.le.s32.totalorder %v1547_v22, %v1545_v21  ;;  %s1429_s21 = scalar_lea.vmem %s1149_s20, 256  ;;  %p1434_p11 = scmp.lt.s32.totalorder %s1149_s20, %s1149_s20 }
  0x21   :  { %p1430_p10 = scmp.ne.s32.totalorder %s1149_s20, %s1429_s21  ;;  %p1435_p12 = scmp.lt.s32.totalorder %s1429_s21, %s1429_s21 }
  0x23   :  { %1232 = vmatpush3.bf16.msra.mxu0 %v1344_v2  ;;  %p1436_p13 = por %p1435_p12, %p1434_p11 }
  0x24   :  { %1243 = vmatprep.subr.bf16.mxu0 %v1459_v0 }
  0x25   :  { %p1437_p0 = pnand %p1436_p13, %p1430_p10 }
  0x26   :  { %1234 = vmatmul.mubr.msk.bf16.vlgmr.msra.gmra.mxu0 %vm86_vm1, %v73_v5 }
  0x27   :  { %1245 = vmatprep.mubr.msk.bf16.mxu0 %vm1460_vm0, %v1459_v0 }
  0xe6   :  { %v124_v6 = vpop.f32.mrf.mxu0 }
  0xe7   :  { %v135_v7 = vpack.c.bf16 %v124_v6, %v124_v6  ;;  %v131_v14 = vmul.f32 0.17677669, %v124_v6 }
  0xe8   :  { %v1235_v8 = vpop.f32.mrf.mxu0 }
  0xe9   :  { %138 = vrot.lane.b32.xlu0 %v135_v7, %s1461_s11  ;;  %v133_v17 = vpack.c.bf16 %v131_v14, %v131_v14 }
  0xea   :  { %v127_v9 = vpop.f32.mrf.mxu0 }
  0xeb   :  { %v136_v10 = vpack.c.bf16 %v127_v9, %v127_v9  ;;  %v132_v18 = vmul.f32 0.17677669, %v127_v9 }
  0xec   :  { %v1236_v11 = vpop.f32.mrf.mxu0 }
  0xed   :  { %187 = vrot.lane.b32.xlu0 %v136_v10, %s1461_s11  ;;  %v134_v19 = vpack.c.bf16 %v132_v18, %v132_v18 }
 0x15b   :  { %v139_v12 = vpop.permute.xlu0 %138 }
 0x15c   :  { %v144_v13 = vsel %vm86_vm1, %v139_v12, 0 }
 0x15d   :  { %1238 = vmatpush3.bf16.xpose.msra.mxu1 %v144_v13 }
 0x15e   :  { %1249 = vmatprep.subr.bf16.mxu1 %v1459_v0 }
 0x15f   :  { %v188_v15 = vpop.permute.xlu0 %187 }
 0x160   :  { %v193_v16 = vsel %vm86_vm1, %v188_v15, 0 }
 0x161   :  { %1244 = vmatpush3.bf16.xpose.msra.mxu0 %v193_v16  ;;  %v1345_v16 = vld [vmem:[#allocation5 + $0x8] sm:$0xff]  }
 0x162   :  { %1255 = vmatprep.subr.bf16.mxu0 %v1459_v0 }
 0x164   :  { %1240 = vmatmul.mubr.msk.bf16.vlgmr.msra.gmra.mxu1 %vm86_vm1, %v133_v17  ;;  %v1346_v17 = vld [vmem:[#allocation5] sm:$0xff]  }
 0x165   :  { %1251 = vmatprep.mubr.msk.bf16.mxu1 %vm1460_vm0, %v1459_v0 }
 0x168   :  { %1246 = vmatmul.mubr.msk.bf16.vlgmr.msra.gmra.mxu0 %vm86_vm1, %v134_v19 }
 0x169   :  { %1257 = vmatprep.mubr.msk.bf16.mxu0 %vm1460_vm0, %v1459_v0 }
 0x224   :  { %v180_v23 = vpop.f32.mrf.mxu1 }
 0x225   :  { %v237_v24 = vsel %vm57_vm2, %v180_v23, -inf }
 0x226   :  { %v1241_v25 = vpop.f32.mrf.mxu1  ;;  %v240_v26 = vsel %vm239_vm3, %v237_v24, -inf }
 0x227   :  { %241 = vmax.xlane.f32.xlu1 %v240_v26  ;;  %v392_v26 = vsub.s32 0, %v1545_v21 }
 0x228   :  { %v183_v27 = vpop.f32.mrf.mxu1  ;;  %v229_v28 = vpop.f32.mrf.mxu0 }
 0x229   :  { %v238_v29 = vsel %vm57_vm2, %v229_v28, -inf  ;;  %v1585_v27 = vld [vmem:[%s1724_s3] sm:$0x3f] }
 0x22a   :  { %v1242_v30 = vpop.f32.mrf.mxu1  ;;  %v1247_v31 = vpop.f32.mrf.mxu0  ;;  %v243_v32 = vsel %vm239_vm3, %v238_v29, -inf }
 0x22b   :  { %244 = vmax.xlane.f32.xlu1 %v243_v32  ;;  %v393_v30 = vrot.slane %v1585_v27, %v392_v26  ;;  %v398_v31 = vsub.s32 1, %v1545_v21 }
 0x22c   :  { %v232_v33 = vpop.f32.mrf.mxu0 }
 0x22e   :  { %v1248_v34 = vpop.f32.mrf.mxu0 }
 0x23c   :  { %264 = vrot.lane.b32.xlu1 %v135_v7, %s1456_s24 }
 0x2b0   :  { %v242_v35 = vpop.xlane.xlu1 %241 }
 0x2b1   :  { %v246_v36 = vsub.f32 %v237_v24, %v242_v35  ;;  %v399_v35 = vrot.slane %v1585_v27, %v398_v31 }
 0x2b3   :  { %v248_v37 = vmul.f32 1.442695, %v246_v36 }
 0x2b4   :  { %v245_v38 = vpop.xlane.xlu1 %244 }
 0x2b5   :  { %1357 = vpow2.f32 %v248_v37  ;;  %v247_v39 = vsub.f32 %v238_v29, %v245_v38 }
 0x2b7   :  { %v250_v40 = vmul.f32 1.442695, %v247_v39 }
 0x2b8   :  { %v265_v41 = vpop.permute.xlu1 %264 }
 0x2b9   :  { %1359 = vpow2.f32 %v250_v40  ;;  %v271_v42 = vsel %vm269_vm4, %v265_v41, 0  ;;  %v1347_v40 = vld [vmem:[#allocation5 + $0x18] sm:$0xff]   ;;  %v1348_v41 = vld [vmem:[#allocation5 + $0x10] sm:$0xff]  }
 0x2ba   :  { %1250 = vmatpush3.bf16.msra.mxu1 %v271_v42  ;;  %v405_v42 = vsub.s32 2, %v1545_v21 }
 0x2bb   :  { %1261 = vmatprep.subr.bf16.mxu1 %v1459_v0 }
 0x2c2   :  { %v1358_v43 = vpop.eup %1357 }
 0x2c3   :  { %v252_v44 = vsel %vm239_vm3, %v1358_v43, 0.0 }
 0x2c4   :  { %253 = vadd.xlane.f32.xlu0 %v252_v44 }
 0x2c6   :  { %v1360_v45 = vpop.eup %1359 }
 0x2c7   :  { %v255_v46 = vsel %vm239_vm3, %v1360_v45, 0.0 }
 0x2c8   :  { %256 = vadd.xlane.f32.xlu1 %v255_v46 }
 0x2d9   :  { %313 = vrot.lane.b32.xlu1 %v136_v10, %s1456_s24 }
 0x34d   :  { %v254_v47 = vpop.xlane.xlu0 %253 }
 0x34e   :  { %1361 = vrcp.f32 %v254_v47 }
 0x351   :  { %v257_v48 = vpop.xlane.xlu1 %256 }
 0x352   :  { %1363 = vrcp.f32 %v257_v48 }
 0x355   :  { %v314_v49 = vpop.permute.xlu1 %313 }
 0x356   :  { %v319_v50 = vsel %vm269_vm4, %v314_v49, 0 }
 0x357   :  { %1256 = vmatpush3.bf16.msra.mxu0 %v319_v50 }
 0x358   :  { %1269 = vmatprep.subr.bf16.mxu0 %v1459_v0 }
 0x35b   :  { %v1362_v51 = vpop.eup %1361 }
 0x35c   :  { %v260_v52 = vmul.f32 %v1362_v51, %v1358_v43  ;;  %v406_v43 = vrot.slane %v1585_v27, %v405_v42 }
 0x35e   :  { %v262_v53 = vpack.c.bf16 %v260_v52, %v260_v52 }
 0x35f   :  { %v1364_v54 = vpop.eup %1363 }
 0x360   :  { %1252 = vmatmul.mubr.msk.bf16.vlgmr.msra.gmra.mxu1 %vm239_vm3, %v262_v53  ;;  %v261_v55 = vmul.f32 %v1364_v54, %v1360_v45  ;;  %v526_v53 = vsub.s32 3, %v1545_v21 }
 0x361   :  { %1265 = vmatprep.mubr.msk.bf16.mxu1 %vm1460_vm0, %v1459_v0  ;;  %1262 = vmatpush3.bf16.msra.mxu1 %v1345_v16 }
 0x362   :  { %v263_v56 = vpack.c.bf16 %v261_v55, %v261_v55  ;;  %1263 = vmatprep.subr.bf16.mxu1 %v1459_v0  ;;  %v527_v54 = vrot.slane %v1585_v27, %v526_v53 }
 0x364   :  { %1258 = vmatmul.mubr.msk.bf16.vlgmr.msra.gmra.mxu0 %vm239_vm3, %v263_v56 }
 0x365   :  { %1273 = vmatprep.mubr.msk.bf16.mxu0 %vm1460_vm0, %v1459_v0  ;;  %1264 = vmatpush3.bf16.msra.mxu1 %v1346_v17 }
 0x366   :  { %1277 = vmatprep.subr.bf16.mxu1 %v1459_v0  ;;  %1270 = vmatpush3.bf16.msra.mxu0 %v1347_v40 }
 0x367   :  { %1271 = vmatprep.subr.bf16.mxu0 %v1459_v0 }
 0x36a   :  { %1272 = vmatpush3.bf16.msra.mxu0 %v1348_v41 }
 0x36b   :  { %1285 = vmatprep.subr.bf16.mxu0 %v1459_v0 }
 0x420   :  { %v307_v57 = vpop.f32.mrf.mxu1 }
 0x421   :  { %v361_v58 = vadd.f32 %v307_v57, %v1519_v3 }
 0x422   :  { %v1253_v59 = vpop.f32.mrf.mxu1 }
 0x423   :  { %v363_v60 = vsel %vm86_vm1, %v361_v58, 0.0 }
 0x424   :  { %364 = vadd.xlane.f32.xlu1 %v363_v60  ;;  %v310_v61 = vpop.f32.mrf.mxu1  ;;  %v355_v62 = vpop.f32.mrf.mxu0 }
 0x425   :  { %v362_v63 = vadd.f32 %v355_v62, %v1524_v4 }
 0x426   :  { %v1254_v1 = vpop.f32.mrf.mxu1  ;;  %v1259_v2 = vpop.f32.mrf.mxu0 }
 0x427   :  { %v366_v5 = vsel %vm86_vm1, %v362_v63, 0.0 }
 0x428   :  { %367 = vadd.xlane.f32.xlu0 %v366_v5  ;;  %v358_v6 = vpop.f32.mrf.mxu0 }
 0x42a   :  { %v1260_v7 = vpop.f32.mrf.mxu0 }
 0x4ad   :  { %v365_v8 = vpop.xlane.xlu1 %364 }
 0x4ae   :  { %v370_v9 = vmul.f32 0.03125, %v365_v8 }
 0x4b0   :  { %v372_v10 = vsub.f32 %v361_v58, %v370_v9 }
 0x4b1   :  { %v368_v11 = vpop.xlane.xlu0 %367 }
 0x4b2   :  { %v371_v3 = vmul.f32 0.03125, %v368_v11  ;;  %v374_v12 = vmul.f32 %v372_v10, %v372_v10 }
 0x4b4   :  { %v373_v13 = vsub.f32 %v362_v63, %v371_v3  ;;  %v376_v14 = vsel %vm86_vm1, %v374_v12, 0.0 }
 0x4b5   :  { %377 = vadd.xlane.f32.xlu0 %v376_v14  ;;  %v1350_v14 = vld [vmem:[#allocation2 + $0x10] sm:$0xff]  }
 0x4b6   :  { %v375_v15 = vmul.f32 %v373_v13, %v373_v13 }
 0x4b8   :  { %v379_v4 = vsel %vm86_vm1, %v375_v15, 0.0 }
 0x4b9   :  { %380 = vadd.xlane.f32.xlu0 %v379_v4 }
 0x53e   :  { %v378_v18 = vpop.xlane.xlu0 %377 }
 0x53f   :  { %v382_v19 = vmul.f32 0.03125, %v378_v18 }
 0x541   :  { %v384_v20 = vadd.f32 1e-05, %v382_v19 }
 0x542   :  { %v381_v23 = vpop.xlane.xlu0 %380 }
 0x543   :  { %1365 = vrsqrt.f32 %v384_v20  ;;  %v383_v24 = vmul.f32 0.03125, %v381_v23  ;;  %v558_v20 = vsub.s32 4, %v1545_v21 }
 0x545   :  { %v385_v25 = vadd.f32 1e-05, %v383_v24 }
 0x547   :  { %1367 = vrsqrt.f32 %v385_v25  ;;  %v559_v25 = vrot.slane %v1585_v27, %v558_v20 }
 0x550   :  { %v1366_v28 = vpop.eup %1365 }
 0x551   :  { %v388_v29 = vmul.f32 %v1366_v28, %v372_v10  ;;  %v564_v28 = vsub.s32 5, %v1545_v21 }
 0x553   :  { %v394_v34 = vmul.f32 %v393_v30, %v388_v29 }
 0x554   :  { %v1368_v32 = vpop.eup %1367 }
 0x555   :  { %v389_v33 = vmul.f32 %v1368_v32, %v373_v13  ;;  %v400_v37 = vadd.f32 %v399_v35, %v394_v34  ;;  %v1349_v13 = vld [vmem:[#allocation2 + $0x18] sm:$0xff]  }
 0x557   :  { %v395_v36 = vmul.f32 %v393_v30, %v389_v33  ;;  %v565_v33 = vrot.slane %v1585_v27, %v564_v28 }
 0x559   :  { %v401_v38 = vadd.f32 %v399_v35, %v395_v36 }
 0x55b   :  { %v402_v39 = vpack.c.bf16 %v401_v38, %v400_v37 }
 0x55d   :  { %1266 = vmatmul.mubr.msk.bf16.vlgmr.msra.gmra.mxu1 %vm86_vm1, %v402_v39 }
 0x55e   :  { %1281 = vmatprep.mubr.msk.bf16.mxu1 %vm1460_vm0, %v1459_v0  ;;  %1278 = vmatpush3.bf16.msra.mxu1 %v1349_v13 }
 0x55f   :  { %1279 = vmatprep.subr.bf16.mxu1 %v1459_v0 }
 0x562   :  { %1280 = vmatpush3.bf16.msra.mxu1 %v1350_v14 }
 0x563   :  { %1291 = vmatprep.subr.bf16.mxu1 %v1459_v0 }
 0x61d   :  { %v456_v44 = vpop.f32.mrf.mxu1 }
 0x61e   :  { %v457_v46 = vadd.f32 %v456_v44, %v406_v43 }
 0x61f   :  { %v1267_v45 = vpop.f32.mrf.mxu1 }
 0x620   :  { %v463_v50 = vmax.f32 %v457_v46, 0.0 }
 0x621   :  { %v459_v47 = vpop.f32.mrf.mxu1 }
 0x622   :  { %v460_v48 = vadd.f32 %v459_v47, %v406_v43 }
 0x623   :  { %v1268_v49 = vpop.f32.mrf.mxu1 }
 0x624   :  { %v464_v51 = vmax.f32 %v460_v48, 0.0 }
 0x626   :  { %v465_v52 = vpack.c.bf16 %v464_v51, %v463_v50 }
 0x628   :  { %1274 = vmatmul.mubr.msk.bf16.vlgmr.msra.gmra.mxu0 %vm86_vm1, %v465_v52 }
 0x629   :  { %1287 = vmatprep.mubr.msk.bf16.mxu0 %vm1460_vm0, %v1459_v0 }
 0x6e8   :  { %v515_v55 = vpop.f32.mrf.mxu0 }
 0x6e9   :  { %v522_v56 = vadd.f32 %v515_v55, %v400_v37 }
 0x6ea   :  { %v1275_v57 = vpop.f32.mrf.mxu0 }
 0x6eb   :  { %v528_v58 = vadd.f32 %v527_v54, %v522_v56 }
 0x6ec   :  { %v518_v59 = vpop.f32.mrf.mxu0 }
 0x6ed   :  { %v523_v60 = vadd.f32 %v518_v59, %v401_v38  ;;  %v530_v61 = vsel %vm86_vm1, %v528_v58, 0.0 }
 0x6ee   :  { %531 = vadd.xlane.f32.xlu0 %v530_v61  ;;  %v1276_v62 = vpop.f32.mrf.mxu0 }
 0x6ef   :  { %v529_v63 = vadd.f32 %v527_v54, %v523_v60 }
 0x6f1   :  { %v533_v1 = vsel %vm86_vm1, %v529_v63, 0.0 }
 0x6f2   :  { %534 = vadd.xlane.f32.xlu0 %v533_v1 }
 0x777   :  { %v532_v2 = vpop.xlane.xlu0 %531 }
 0x778   :  { %v536_v5 = vmul.f32 0.03125, %v532_v2 }
 0x77a   :  { %v538_v6 = vsub.f32 %v528_v58, %v536_v5 }
 0x77b   :  { %v535_v7 = vpop.xlane.xlu0 %534 }
 0x77c   :  { %v537_v8 = vmul.f32 0.03125, %v535_v7  ;;  %v540_v9 = vmul.f32 %v538_v6, %v538_v6 }
 0x77e   :  { %v539_v10 = vsub.f32 %v529_v63, %v537_v8  ;;  %v542_v11 = vsel %vm86_vm1, %v540_v9, 0.0 }
 0x77f   :  { %543 = vadd.xlane.f32.xlu0 %v542_v11 }
 0x780   :  { %v541_v3 = vmul.f32 %v539_v10, %v539_v10 }
 0x782   :  { %v545_v12 = vsel %vm86_vm1, %v541_v3, 0.0 }
 0x783   :  { %546 = vadd.xlane.f32.xlu0 %v545_v12 }
 0x808   :  { %v544_v15 = vpop.xlane.xlu0 %543 }
 0x809   :  { %v548_v4 = vmul.f32 0.03125, %v544_v15 }
 0x80b   :  { %v550_v16 = vadd.f32 1e-05, %v548_v4 }
 0x80c   :  { %v547_v17 = vpop.xlane.xlu0 %546 }
 0x80d   :  { %1369 = vrsqrt.f32 %v550_v16  ;;  %v549_v18 = vmul.f32 0.03125, %v547_v17 }
 0x80f   :  { %v551_v19 = vadd.f32 1e-05, %v549_v18 }
 0x811   :  { %1371 = vrsqrt.f32 %v551_v19 }
 0x81a   :  { %v1370_v23 = vpop.eup %1369 }
 0x81b   :  { %v554_v24 = vmul.f32 %v1370_v23, %v538_v6 }
 0x81d   :  { %v560_v32 = vmul.f32 %v559_v25, %v554_v24 }
 0x81e   :  { %v1372_v29 = vpop.eup %1371 }
 0x81f   :  { %v555_v30 = vmul.f32 %v1372_v29, %v539_v10  ;;  %v1624_v35 = vadd.f32 %v565_v33, %v560_v32 }
 0x821   :  { %v561_v34 = vmul.f32 %v559_v25, %v555_v30 }
 0x823   :  { %v1626_v36 = vadd.f32 %v565_v33, %v561_v34 }
 0x825   :  { %v584_v37 = vpack.c.bf16 %v1626_v36, %v1624_v35 }
 0x827   :  { %1282 = vmatmul.mubr.msk.bf16.vlgmr.msra.gmra.mxu1 %vm86_vm1, %v584_v37 }
 0x828   :  { %1293 = vmatprep.mubr.msk.bf16.mxu1 %vm1460_vm0, %v1459_v0 }
 0x8e7   :  { %v634_v38 = vpop.f32.mrf.mxu1 }
 0x8e8   :  { %v645_v39 = vpack.c.bf16 %v634_v38, %v634_v38  ;;  %v641_v46 = vmul.f32 0.17677669, %v634_v38 }
 0x8e9   :  { %v1283_v40 = vpop.f32.mrf.mxu1 }
 0x8ea   :  { %648 = vrot.lane.b32.xlu0 %v645_v39, %s1461_s11  ;;  %v643_v49 = vpack.c.bf16 %v641_v46, %v641_v46 }
 0x8eb   :  { %v637_v41 = vpop.f32.mrf.mxu1 }
 0x8ec   :  { %v646_v27 = vpack.c.bf16 %v637_v41, %v637_v41  ;;  %v642_v50 = vmul.f32 0.17677669, %v637_v41 }
 0x8ed   :  { %v1284_v43 = vpop.f32.mrf.mxu1 }
 0x8ee   :  { %697 = vrot.lane.b32.xlu1 %v646_v27, %s1461_s11  ;;  %v644_v51 = vpack.c.bf16 %v642_v50, %v642_v50 }
 0x95c   :  { %v649_v44 = vpop.permute.xlu0 %648 }
 0x95d   :  { %v654_v45 = vsel %vm86_vm1, %v649_v44, 0 }
 0x95e   :  { %1286 = vmatpush3.bf16.xpose.msra.mxu0 %v654_v45 }
 0x95f   :  { %1297 = vmatprep.subr.bf16.mxu0 %v1459_v0 }
 0x960   :  { %v698_v47 = vpop.permute.xlu1 %697 }
 0x961   :  { %v703_v48 = vsel %vm86_vm1, %v698_v47, 0 }
 0x962   :  { %1292 = vmatpush3.bf16.xpose.msra.mxu1 %v703_v48 }
 0x963   :  { %1303 = vmatprep.subr.bf16.mxu1 %v1459_v0 }
 0x965   :  { %1288 = vmatmul.mubr.msk.bf16.vlgmr.msra.gmra.mxu0 %vm86_vm1, %v643_v49 }
 0x966   :  { %1299 = vmatprep.mubr.msk.bf16.mxu0 %vm1460_vm0, %v1459_v0 }
 0x969   :  { %1294 = vmatmul.mubr.msk.bf16.vlgmr.msra.gmra.mxu1 %vm86_vm1, %v644_v51 }
 0x96a   :  { %1305 = vmatprep.mubr.msk.bf16.mxu1 %vm1460_vm0, %v1459_v0 }
 0xa25   :  { %v690_v52 = vpop.f32.mrf.mxu0 }
 0xa26   :  { %v745_v54 = vsel %vm57_vm2, %v690_v52, -inf  ;;  %v1351_v52 = vld [vmem:[#allocation5 + $0x28] sm:$0xff]  }
 0xa27   :  { %v1289_v55 = vpop.f32.mrf.mxu0  ;;  %v747_v56 = vsel %vm239_vm3, %v745_v54, -inf }
 0xa28   :  { %748 = vmax.xlane.f32.xlu1 %v747_v56 }
 0xa29   :  { %v693_v57 = vpop.f32.mrf.mxu0  ;;  %v739_v58 = vpop.f32.mrf.mxu1 }
 0xa2a   :  { %v746_v59 = vsel %vm57_vm2, %v739_v58, -inf }
 0xa2b   :  { %v1290_v60 = vpop.f32.mrf.mxu0  ;;  %v1295_v61 = vpop.f32.mrf.mxu1  ;;  %v750_v62 = vsel %vm239_vm3, %v746_v59, -inf }
 0xa2c   :  { %751 = vmax.xlane.f32.xlu0 %v750_v62  ;;  %v1678_v61 = vld [vmem:[%s1724_s3 + $0x8] sm:$0x3f] }
 0xa2d   :  { %v742_v63 = vpop.f32.mrf.mxu1 }
 0xa2f   :  { %v1296_v1 = vpop.f32.mrf.mxu1 }
 0xa30   :  { %v898_v1 = vrot.slane %v1678_v61, %v392_v26  ;;  %v1354_v26 = vld [vmem:[#allocation5 + $0x30] sm:$0xff]  }
 0xab1   :  { %v749_v2 = vpop.xlane.xlu1 %748 }
 0xab2   :  { %v753_v5 = vsub.f32 %v745_v54, %v749_v2  ;;  %v1352_v54 = vld [vmem:[#allocation5 + $0x20] sm:$0xff]  }
 0xab4   :  { %v755_v6 = vmul.f32 1.442695, %v753_v5 }
 0xab5   :  { %v752_v7 = vpop.xlane.xlu0 %751 }
 0xab6   :  { %1373 = vpow2.f32 %v755_v6  ;;  %v754_v8 = vsub.f32 %v746_v59, %v752_v7  ;;  %v904_v7 = vrot.slane %v1678_v61, %v398_v31 }
 0xab8   :  { %v757_v9 = vmul.f32 1.442695, %v754_v8 }
 0xaba   :  { %1375 = vpow2.f32 %v757_v9 }
 0xac3   :  { %v1374_v10 = vpop.eup %1373 }
 0xac4   :  { %v759_v11 = vsel %vm239_vm3, %v1374_v10, 0.0 }
 0xac5   :  { %760 = vadd.xlane.f32.xlu0 %v759_v11 }
 0xac7   :  { %v1376_v22 = vpop.eup %1375 }
 0xac8   :  { %v762_v3 = vsel %vm239_vm3, %v1376_v22, 0.0 }
 0xac9   :  { %763 = vadd.xlane.f32.xlu1 %v762_v3  ;;  %v911_v3 = vrot.slane %v1678_v61, %v405_v42 }
 0xada   :  { %819 = vrot.lane.b32.xlu1 %v646_v27, %s1456_s24 }
 0xadb   :  { %771 = vrot.lane.b32.xlu0 %v645_v39, %s1456_s24 }
 0xb4e   :  { %v761_v12 = vpop.xlane.xlu0 %760 }
 0xb4f   :  { %1377 = vrcp.f32 %v761_v12 }
 0xb52   :  { %v772_v13 = vpop.permute.xlu0 %771  ;;  %v764_v14 = vpop.xlane.xlu1 %763 }
 0xb53   :  { %v777_v15 = vsel %vm269_vm4, %v772_v13, 0  ;;  %1379 = vrcp.f32 %v764_v14 }
 0xb54   :  { %1298 = vmatpush3.bf16.msra.mxu0 %v777_v15 }
 0xb55   :  { %1309 = vmatprep.subr.bf16.mxu0 %v1459_v0 }
 0xb56   :  { %v820_v4 = vpop.permute.xlu1 %819 }
 0xb57   :  { %v825_v16 = vsel %vm269_vm4, %v820_v4, 0 }
 0xb58   :  { %1304 = vmatpush3.bf16.msra.mxu1 %v825_v16 }
 0xb59   :  { %1317 = vmatprep.subr.bf16.mxu1 %v1459_v0 }
 0xb5c   :  { %v1378_v17 = vpop.eup %1377 }
 0xb5d   :  { %v767_v18 = vmul.f32 %v1378_v17, %v1374_v10 }
 0xb5f   :  { %v769_v19 = vpack.c.bf16 %v767_v18, %v767_v18 }
 0xb60   :  { %v1380_v23 = vpop.eup %1379 }
 0xb61   :  { %1300 = vmatmul.mubr.msk.bf16.vlgmr.msra.gmra.mxu0 %vm239_vm3, %v769_v19  ;;  %v768_v24 = vmul.f32 %v1380_v23, %v1376_v22  ;;  %v1353_v22 = vld [vmem:[#allocation5 + $0x38] sm:$0xff]   ;;  %v1032_v19 = vrot.slane %v1678_v61, %v526_v53 }
 0xb62   :  { %1313 = vmatprep.mubr.msk.bf16.mxu0 %vm1460_vm0, %v1459_v0  ;;  %1310 = vmatpush3.bf16.msra.mxu0 %v1351_v52 }
 0xb63   :  { %v770_v25 = vpack.c.bf16 %v768_v24, %v768_v24  ;;  %1311 = vmatprep.subr.bf16.mxu0 %v1459_v0 }
 0xb65   :  { %1306 = vmatmul.mubr.msk.bf16.vlgmr.msra.gmra.mxu1 %vm239_vm3, %v770_v25 }
 0xb66   :  { %1321 = vmatprep.mubr.msk.bf16.mxu1 %vm1460_vm0, %v1459_v0  ;;  %1312 = vmatpush3.bf16.msra.mxu0 %v1352_v54 }
 0xb67   :  { %1325 = vmatprep.subr.bf16.mxu0 %v1459_v0  ;;  %1318 = vmatpush3.bf16.msra.mxu1 %v1353_v22 }
 0xb68   :  { %1319 = vmatprep.subr.bf16.mxu1 %v1459_v0 }
 0xb6b   :  { %1320 = vmatpush3.bf16.msra.mxu1 %v1354_v26 }
 0xc21   :  { %v813_v29 = vpop.f32.mrf.mxu0 }
 0xc22   :  { %v867_v30 = vadd.f32 %v813_v29, %v1624_v35 }
 0xc23   :  { %v1301_v32 = vpop.f32.mrf.mxu0 }
 0xc24   :  { %v869_v33 = vsel %vm86_vm1, %v867_v30, 0.0 }
 0xc25   :  { %v861_v34 = vpop.f32.mrf.mxu1  ;;  %870 = vadd.xlane.f32.xlu1 %v869_v33  ;;  %v816_v37 = vpop.f32.mrf.mxu0 }
 0xc26   :  { %v868_v38 = vadd.f32 %v861_v34, %v1626_v36 }
 0xc27   :  { %v1302_v39 = vpop.f32.mrf.mxu0  ;;  %v1307_v40 = vpop.f32.mrf.mxu1 }
 0xc28   :  { %v872_v41 = vsel %vm86_vm1, %v868_v38, 0.0 }
 0xc29   :  { %873 = vadd.xlane.f32.xlu0 %v872_v41  ;;  %v864_v27 = vpop.f32.mrf.mxu1 }
 0xc2b   :  { %v1308_v43 = vpop.f32.mrf.mxu1 }
 0xcae   :  { %v871_v44 = vpop.xlane.xlu1 %870 }
 0xcaf   :  { %v875_v45 = vmul.f32 0.03125, %v871_v44 }
 0xcb1   :  { %v877_v46 = vsub.f32 %v867_v30, %v875_v45 }
 0xcb2   :  { %v874_v47 = vpop.xlane.xlu0 %873 }
 0xcb3   :  { %v876_v35 = vmul.f32 0.03125, %v874_v47  ;;  %v879_v48 = vmul.f32 %v877_v46, %v877_v46  ;;  %v1355_v47 = vld [vmem:[%s1725_s4 + $0x8] sm:$0xff]  }
 0xcb5   :  { %v878_v49 = vsub.f32 %v868_v38, %v876_v35  ;;  %v881_v50 = vsel %vm86_vm1, %v879_v48, 0.0  ;;  %v1356_v35 = vld [vmem:[%s1725_s4] sm:$0xff]  }
 0xcb6   :  { %882 = vadd.xlane.f32.xlu0 %v881_v50 }
 0xcb7   :  { %v880_v51 = vmul.f32 %v878_v49, %v878_v49 }
 0xcb9   :  { %v884_v36 = vsel %vm86_vm1, %v880_v51, 0.0 }
 0xcba   :  { %885 = vadd.xlane.f32.xlu1 %v884_v36 }
 0xd3f   :  { %v883_v55 = vpop.xlane.xlu0 %882 }
 0xd40   :  { %v887_v56 = vmul.f32 0.03125, %v883_v55 }
 0xd42   :  { %v889_v57 = vadd.f32 1e-05, %v887_v56  ;;  %v1064_v56 = vrot.slane %v1678_v61, %v558_v20 }
 0xd43   :  { %v886_v58 = vpop.xlane.xlu1 %885 }
 0xd44   :  { %1381 = vrsqrt.f32 %v889_v57  ;;  %v888_v59 = vmul.f32 0.03125, %v886_v58 }
 0xd46   :  { %v890_v60 = vadd.f32 1e-05, %v888_v59 }
 0xd48   :  { %1383 = vrsqrt.f32 %v890_v60 }
 0xd51   :  { %v1382_v62 = vpop.eup %1381 }
 0xd52   :  { %v893_v63 = vmul.f32 %v1382_v62, %v877_v46 }
 0xd54   :  { %v899_v6 = vmul.f32 %v898_v1, %v893_v63 }
 0xd55   :  { %v1384_v2 = vpop.eup %1383 }
 0xd56   :  { %v894_v5 = vmul.f32 %v1384_v2, %v878_v49  ;;  %v905_v9 = vadd.f32 %v904_v7, %v899_v6  ;;  %v1188_v2 = vld [vmem:[%s1726_s5] ss:$0 sm:$0xff] }
 0xd58   :  { %v900_v8 = vmul.f32 %v898_v1, %v894_v5 }
 0xd5a   :  { %v906_v10 = vadd.f32 %v904_v7, %v900_v8 }
 0xd5c   :  { %v907_v11 = vpack.c.bf16 %v906_v10, %v905_v9 }
 0xd5e   :  { %1314 = vmatmul.mubr.msk.bf16.vlgmr.msra.gmra.mxu0 %vm86_vm1, %v907_v11 }
 0xd5f   :  { %1329 = vmatprep.mubr.msk.bf16.mxu0 %vm1460_vm0, %v1459_v0  ;;  %1326 = vmatpush3.bf16.msra.mxu0 %v1355_v47 }
 0xd60   :  { %1327 = vmatprep.subr.bf16.mxu0 %v1459_v0  ;;  %v1070_v0 = vrot.slane %v1678_v61, %v564_v28 }
 0xd63   :  { %1328 = vmatpush3.bf16.msra.mxu0 %v1356_v35 }
 0xe1e   :  { %v961_v31 = vpop.f32.mrf.mxu0 }
 0xe1f   :  { %v962_v13 = vadd.f32 %v961_v31, %v911_v3 }
 0xe20   :  { %v1315_v12 = vpop.f32.mrf.mxu0 }
 0xe21   :  { %v968_v16 = vmax.f32 %v962_v13, 0.0 }
 0xe22   :  { %v964_v14 = vpop.f32.mrf.mxu0 }
 0xe23   :  { %v965_v15 = vadd.f32 %v964_v14, %v911_v3 }
 0xe24   :  { %v1316_v4 = vpop.f32.mrf.mxu0 }
 0xe25   :  { %v969_v17 = vmax.f32 %v965_v15, 0.0 }
 0xe27   :  { %v970_v18 = vpack.c.bf16 %v969_v17, %v968_v16 }
 0xe29   :  { %1322 = vmatmul.mubr.msk.bf16.vlgmr.msra.gmra.mxu1 %vm86_vm1, %v970_v18 }
 0xee9   :  { %v1020_v23 = vpop.f32.mrf.mxu1 }
 0xeea   :  { %v1027_v24 = vadd.f32 %v1020_v23, %v905_v9 }
 0xeeb   :  { %v1323_v25 = vpop.f32.mrf.mxu1 }
 0xeec   :  { %v1033_v29 = vadd.f32 %v1032_v19, %v1027_v24 }
 0xeed   :  { %v1023_v42 = vpop.f32.mrf.mxu1 }
 0xeee   :  { %v1028_v30 = vadd.f32 %v1023_v42, %v906_v10  ;;  %v1035_v32 = vsel %vm86_vm1, %v1033_v29, 0.0 }
 0xeef   :  { %1036 = vadd.xlane.f32.xlu0 %v1035_v32  ;;  %v1324_v33 = vpop.f32.mrf.mxu1 }
 0xef0   :  { %v1034_v34 = vadd.f32 %v1032_v19, %v1028_v30 }
 0xef2   :  { %v1038_v37 = vsel %vm86_vm1, %v1034_v34, 0.0 }
 0xef3   :  { %1039 = vadd.xlane.f32.xlu1 %v1038_v37 }
 0xf78   :  { %v1037_v38 = vpop.xlane.xlu0 %1036 }
 0xf79   :  { %v1041_v39 = vmul.f32 0.03125, %v1037_v38 }
 0xf7b   :  { %v1043_v40 = vsub.f32 %v1033_v29, %v1041_v39 }
 0xf7c   :  { %v1040_v41 = vpop.xlane.xlu1 %1039 }
 0xf7d   :  { %v1042_v27 = vmul.f32 0.03125, %v1040_v41  ;;  %v1045_v53 = vmul.f32 %v1043_v40, %v1043_v40 }
 0xf7f   :  { %v1044_v43 = vsub.f32 %v1034_v34, %v1042_v27  ;;  %v1047_v44 = vsel %vm86_vm1, %v1045_v53, 0.0 }
 0xf80   :  { %1048 = vadd.xlane.f32.xlu0 %v1047_v44 }
 0xf81   :  { %v1046_v45 = vmul.f32 %v1044_v43, %v1044_v43 }
 0xf83   :  { %v1050_v46 = vsel %vm86_vm1, %v1046_v45, 0.0 }
 0xf84   :  { %1051 = vadd.xlane.f32.xlu1 %v1050_v46 }
0x1009   :  { %v1049_v48 = vpop.xlane.xlu0 %1048 }
0x100a   :  { %v1053_v49 = vmul.f32 0.03125, %v1049_v48 }
0x100c   :  { %v1055_v50 = vadd.f32 1e-05, %v1053_v49 }
0x100d   :  { %v1052_v51 = vpop.xlane.xlu1 %1051 }
0x100e   :  { %1385 = vrsqrt.f32 %v1055_v50  ;;  %v1054_v36 = vmul.f32 0.03125, %v1052_v51 }
0x1010   :  { %v1056_v52 = vadd.f32 1e-05, %v1054_v36 }
0x1012   :  { %1387 = vrsqrt.f32 %v1056_v52 }
0x101b   :  { %v1386_v54 = vpop.eup %1385 }
0x101c   :  { %v1059_v55 = vmul.f32 %v1386_v54, %v1043_v40 }
0x101e   :  { %v1065_v59 = vmul.f32 %v1064_v56, %v1059_v55 }
0x101f   :  { %v1388_v57 = vpop.eup %1387 }
0x1020   :  { %v1060_v58 = vmul.f32 %v1388_v57, %v1044_v43  ;;  %v1071_v62 = vadd.f32 %v1070_v0, %v1065_v59 }
0x1022   :  { %v1066_v60 = vmul.f32 %v1064_v56, %v1060_v58 }
0x1024   :  { %v1072_v63 = vadd.f32 %v1070_v0, %v1066_v60 }
0x1026   :  { %v1073_v1 = vpack.c.bf16 %v1072_v63, %v1071_v62 }
0x1028   :  { %1330 = vmatmul.mubr.msk.bf16.vlgmr.msra.gmra.mxu0 %vm86_vm1, %v1073_v1 }
0x10e8   :  { %v1134_v5 = vpop.f32.mrf.mxu0 }
0x10e9   :  { %v1135_v6 = vadd.f32 %v1188_v2, %v1134_v5 }
0x10ea   :  { %v1331_v20 = vpop.f32.mrf.mxu0 }
0x10eb   :  { %1141 = vst [vmem:[#allocation7] sm:$0xff] %v1135_v6 }
0x10ec   :  { %v1137_v7 = vpop.f32.mrf.mxu0 }
0x10ed   :  { %v1138_v21 = vadd.f32 %v1188_v2, %v1137_v7 }
0x10ee   :  { %v1332_v28 = vpop.f32.mrf.mxu0 }
0x10ef   :  { %1142 = vst [vmem:[#allocation7 + $0x8] sm:$0xff] %v1138_v21 }
0x10f0   :  { %1440 = shalt.err (!%p1437_p0)
}
0x10f1   :  { %s1463_s22 = smov 128   ;;  %s1464_s5 = smov 8  }
0x10f2   :  { %1154 = dma.vmem_to_hbm [thread:$0]  %s1149_s20, 256, %s1727_s6, [#allocation4], %s1463_s22, %s1463_s22, %s1464_s5  }
0x10f3   :  { %1453 = dma.done.wait [#allocation4], 256  }
0x10f4   :  { %1454 = vsyncadd [#allocation4], 4294967040 }
0x10f5   :  { %1158 = vsyncpa [#allocation3], 1 }
0x10f6   :  { %1159 = vsyncpa [#allocation6], 1 }
0x10f7   :  { %1160 = vsyncpa [#allocation4], 1 }

</bundles_post_ra>
